<compile_context>
chip_gen: v5e
topology: v5e:2x2
jax: 0.10.0
libtpu: 0.0.40
codegen_flags: <defaults>
</compile_context>

<pallas_src>
import jax
import jax.numpy as jnp
from jax.experimental import pallas as pl
from jax.experimental.pallas import tpu as pltpu

NUM_BLOCKS = 4
IN_DIM = 127
IN_PAD = 128            # lane-aligned contraction dim for fc1
HIDDEN = 128
INTER_DIM_FACTOR = 1
INTER = INTER_DIM_FACTOR * HIDDEN
OUT_DIM = 3
OUT_PAD = 128           # lane-dense output slab; sliced back to 3 in the wrapper


def _softplus(x):
    # numerically-stable softplus (matches F.softplus); exp/log1p go to the EUP slot
    return jnp.maximum(x, 0.0) + jnp.log1p(jnp.exp(-jnp.abs(x)))


def _round_up(a, m):
    return (a + m - 1) // m * m


def geodesic_kernel(x_ref, w1_ref, b1_ref,
                    w_in_ref, b_in_ref, w_out_ref, b_out_ref,
                    w2_ref, b2_ref, out_ref):
    # fc1: bf16 operands, f32 accumulation
    h = jnp.dot(x_ref[...], w1_ref[...],
                preferred_element_type=jnp.float32) + b1_ref[...]
    # 4 residual GeoBlocks (static unroll; TB<=128 keeps h/x0/t within vreg budget)
    for i in range(NUM_BLOCKS):
        x0 = h
        t = jnp.dot(h.astype(jnp.bfloat16), w_in_ref[i],
                    preferred_element_type=jnp.float32) + b_in_ref[i]
        t = _softplus(t)
        t = jnp.dot(t.astype(jnp.bfloat16), w_out_ref[i],
                    preferred_element_type=jnp.float32) + b_out_ref[i]
        # dropout: identity at inference time
        h = t + x0
    # fc2 into a lane-dense [TB, 128] slab (cols >= OUT_DIM are zero)
    out_ref[...] = jnp.dot(h.astype(jnp.bfloat16), w2_ref[...],
                           preferred_element_type=jnp.float32) + b2_ref[...]


def geodesic_net(x, params):
    """x: [B, IN_DIM] f32, params in [in, out] weight layout. Returns [B, OUT_DIM] f32."""
    w1, b1, w_in, b_in, w_out, b_out, w2, b2 = params
    B = x.shape[0]
    TB = min(128, _round_up(max(B, 1), 8))
    B_pad = _round_up(B, TB)
    grid = (B_pad // TB,)

    # Zero-pad to lane-aligned shapes; cast MXU operands to bf16 (biases stay f32).
    x_p = jnp.zeros((B_pad, IN_PAD), jnp.float32).at[:B, :IN_DIM].set(x)
    x_p = x_p.astype(jnp.bfloat16)
    w1_p = jnp.zeros((IN_PAD, HIDDEN), jnp.float32).at[:IN_DIM, :].set(w1)
    w1_p = w1_p.astype(jnp.bfloat16)
    w2_p = jnp.zeros((HIDDEN, OUT_PAD), jnp.float32).at[:, :OUT_DIM].set(w2)
    w2_p = w2_p.astype(jnp.bfloat16)
    b2_p = jnp.zeros((1, OUT_PAD), jnp.float32).at[:, :OUT_DIM].set(b2)
    w_in_b = w_in.astype(jnp.bfloat16)
    w_out_b = w_out.astype(jnp.bfloat16)

    rep2 = lambda shape: pl.BlockSpec(shape, lambda i: (0, 0))
    rep3 = lambda shape: pl.BlockSpec(shape, lambda i: (0, 0, 0))

    cost = pl.CostEstimate(
        flops=2 * B_pad * (IN_PAD * HIDDEN
                           + NUM_BLOCKS * 2 * HIDDEN * INTER
                           + HIDDEN * OUT_PAD),
        transcendentals=2 * NUM_BLOCKS * B_pad * INTER,
        bytes_accessed=(x_p.size * 2
                        + (w1_p.size + w_in_b.size + w_out_b.size + w2_p.size) * 2
                        + (b1.size + b_in.size + b_out.size + b2_p.size) * 4
                        + B_pad * OUT_PAD * 4),
    )

    out_full = pl.pallas_call(
        geodesic_kernel,
        out_shape=jax.ShapeDtypeStruct((B_pad, OUT_PAD), jnp.float32),
        grid=grid,
        in_specs=[
            pl.BlockSpec((TB, IN_PAD), lambda i: (i, 0)),      # x   (pipelined per tile)
            rep2((IN_PAD, HIDDEN)),                            # w1  (replicated)
            rep2((1, HIDDEN)),                                 # b1
            rep3((NUM_BLOCKS, HIDDEN, INTER)),                 # w_in
            rep3((NUM_BLOCKS, 1, INTER)),                      # b_in
            rep3((NUM_BLOCKS, INTER, HIDDEN)),                 # w_out
            rep3((NUM_BLOCKS, 1, HIDDEN)),                     # b_out
            rep2((HIDDEN, OUT_PAD)),                           # w2
            rep2((1, OUT_PAD)),                                # b2
        ],
        out_specs=pl.BlockSpec((TB, OUT_PAD), lambda i: (i, 0)),
        compiler_params=pltpu.CompilerParams(
            dimension_semantics=("parallel",)),
        cost_estimate=cost,
    )(x_p, w1_p, b1, w_in_b, b_in, w_out_b, b_out, w2_p, b2_p)

    return out_full[:B, :OUT_DIM]


def init_params(key):
    """Xavier-normal weights ([in, out] layout), zero biases — matches init_weights()."""
    def xavier(k, fan_in, fan_out, shape):
        std = (2.0 / (fan_in + fan_out)) ** 0.5
        return std * jax.random.normal(k, shape, dtype=jnp.float32)

    keys = jax.random.split(key, 2 + 2 * NUM_BLOCKS)
    w1 = xavier(keys[0], IN_DIM, HIDDEN, (IN_DIM, HIDDEN))
    b1 = jnp.zeros((1, HIDDEN), jnp.float32)
    w_in = jnp.stack([xavier(keys[2 + 2 * i], HIDDEN, INTER, (HIDDEN, INTER))
                      for i in range(NUM_BLOCKS)])               # [4, 128, 128]
    b_in = jnp.zeros((NUM_BLOCKS, 1, INTER), jnp.float32)
    w_out = jnp.stack([xavier(keys[3 + 2 * i], INTER, HIDDEN, (INTER, HIDDEN))
                       for i in range(NUM_BLOCKS)])              # [4, 128, 128]
    b_out = jnp.zeros((NUM_BLOCKS, 1, HIDDEN), jnp.float32)
    w2 = xavier(keys[1], HIDDEN, OUT_DIM, (HIDDEN, OUT_DIM))
    b2 = jnp.zeros((1, OUT_DIM), jnp.float32)
    return (w1, b1, w_in, b_in, w_out, b_out, w2, b2)


def reference(x, params):
    """Pure-JAX reference mirroring the kernel's precision (bf16 operands, f32 accum)."""
    w1, b1, w_in, b_in, w_out, b_out, w2, b2 = params
    bf = lambda a: a.astype(jnp.bfloat16)
    dot = lambda a, b: jax.lax.dot(bf(a), bf(b), preferred_element_type=jnp.float32)
    h = dot(x, w1) + b1
    for i in range(NUM_BLOCKS):
        x0 = h
        t = _softplus(dot(h, w_in[i]) + b_in[i])
        h = dot(t, w_out[i]) + b_out[i] + x0
    return dot(h, w2) + b2


if __name__ == "__main__":
    key = jax.random.PRNGKey(0)
    k_x, k_p = jax.random.split(key)
    B = 8
    x = jax.random.normal(k_x, (B, IN_DIM), dtype=jnp.float32)
    params = init_params(k_p)

    out = jax.jit(geodesic_net)(x, params)
    out = jax.block_until_ready(out)

    ref = reference(x, params)
    assert out.shape == (B, OUT_DIM)
    assert jnp.allclose(out, ref, atol=1e-2, rtol=1e-2), \
        f"max abs err = {jnp.max(jnp.abs(out - ref))}"
    print("KERNEL_OK")
</pallas_src>

<mosaic_0001>
module attributes {stable_mosaic.version = 11 : i64} {
  func.func @geodesic_kernel(%arg0: i32, %arg1: memref<8x128xbf16, #tpu.memory_space<vmem>>, %arg2: memref<128x128xbf16, #tpu.memory_space<vmem>>, %arg3: memref<1x128xf32, #tpu.memory_space<vmem>>, %arg4: memref<4x128x128xbf16, #tpu.memory_space<vmem>>, %arg5: memref<4x1x128xf32, #tpu.memory_space<vmem>>, %arg6: memref<4x128x128xbf16, #tpu.memory_space<vmem>>, %arg7: memref<4x1x128xf32, #tpu.memory_space<vmem>>, %arg8: memref<128x128xbf16, #tpu.memory_space<vmem>>, %arg9: memref<1x128xf32, #tpu.memory_space<vmem>>, %arg10: memref<8x128xf32, #tpu.memory_space<vmem>>) attributes {dimension_semantics = [#tpu.dimension_semantics<parallel>], iteration_bounds = array<i64: 1>, scalar_prefetch = 0 : i64, scratch_operands = 0 : i64, tpu.core_type = #tpu.core_type<tc>, window_params = [{transform_indices = @transform_0, window_bounds = array<i64: 8, 128>}, {pipeline_mode = #tpu.pipeline_mode<synchronous>, transform_indices = @transform_1, window_bounds = array<i64: 128, 128>}, {pipeline_mode = #tpu.pipeline_mode<synchronous>, transform_indices = @transform_2, window_bounds = array<i64: 1, 128>}, {pipeline_mode = #tpu.pipeline_mode<synchronous>, transform_indices = @transform_3, window_bounds = array<i64: 4, 128, 128>}, {pipeline_mode = #tpu.pipeline_mode<synchronous>, transform_indices = @transform_4, window_bounds = array<i64: 4, 1, 128>}, {pipeline_mode = #tpu.pipeline_mode<synchronous>, transform_indices = @transform_5, window_bounds = array<i64: 4, 128, 128>}, {pipeline_mode = #tpu.pipeline_mode<synchronous>, transform_indices = @transform_6, window_bounds = array<i64: 4, 1, 128>}, {pipeline_mode = #tpu.pipeline_mode<synchronous>, transform_indices = @transform_7, window_bounds = array<i64: 128, 128>}, {pipeline_mode = #tpu.pipeline_mode<synchronous>, transform_indices = @transform_8, window_bounds = array<i64: 1, 128>}, {transform_indices = @transform_9, window_bounds = array<i64: 8, 128>}]} {
    %c0 = arith.constant 0 : index
    %c0_0 = arith.constant 0 : index
    %0 = vector.load %arg1[%c0, %c0_0] : memref<8x128xbf16, #tpu.memory_space<vmem>>, vector<8x128xbf16>
    %c0_1 = arith.constant 0 : index
    %c0_2 = arith.constant 0 : index
    %1 = vector.load %arg2[%c0_1, %c0_2] : memref<128x128xbf16, #tpu.memory_space<vmem>>, vector<128x128xbf16>
    %cst = arith.constant dense<0.000000e+00> : vector<8x128xf32>
    %2 = tpu.matmul %0, %1, %cst {dimension_numbers = #tpu.dot_dimension_numbers<[1], [0], [0], [1], [0, 0, 1, 1], [], []>} : vector<8x128xbf16>, vector<128x128xbf16>, vector<8x128xf32> -> vector<8x128xf32>
    %c0_3 = arith.constant 0 : index
    %c0_4 = arith.constant 0 : index
    %3 = vector.load %arg3[%c0_3, %c0_4] : memref<1x128xf32, #tpu.memory_space<vmem>>, vector<1x128xf32>
    %4 = vector.broadcast %3 : vector<1x128xf32> to vector<8x128xf32>
    %5 = arith.addf %2, %4 : vector<8x128xf32>
    %6 = arith.truncf %5 : vector<8x128xf32> to vector<8x128xbf16>
    %c0_5 = arith.constant 0 : index
    %c0_6 = arith.constant 0 : index
    %c0_7 = arith.constant 0 : index
    %7 = vector.load %arg4[%c0_5, %c0_6, %c0_7] : memref<4x128x128xbf16, #tpu.memory_space<vmem>>, vector<1x128x128xbf16>
    %8 = vector.shape_cast %7 : vector<1x128x128xbf16> to vector<128x128xbf16>
    %cst_8 = arith.constant dense<0.000000e+00> : vector<8x128xf32>
    %9 = tpu.matmul %6, %8, %cst_8 {dimension_numbers = #tpu.dot_dimension_numbers<[1], [0], [0], [1], [0, 0, 1, 1], [], []>} : vector<8x128xbf16>, vector<128x128xbf16>, vector<8x128xf32> -> vector<8x128xf32>
    %c0_9 = arith.constant 0 : index
    %c0_10 = arith.constant 0 : index
    %c0_11 = arith.constant 0 : index
    %10 = vector.load %arg5[%c0_9, %c0_10, %c0_11] : memref<4x1x128xf32, #tpu.memory_space<vmem>>, vector<1x1x128xf32>
    %11 = vector.shape_cast %10 : vector<1x1x128xf32> to vector<1x128xf32>
    %12 = vector.broadcast %11 : vector<1x128xf32> to vector<8x128xf32>
    %13 = arith.addf %9, %12 : vector<8x128xf32>
    %cst_12 = arith.constant 0.000000e+00 : f32
    %14 = vector.broadcast %cst_12 : f32 to vector<8x128xf32>
    %15 = arith.maximumf %13, %14 : vector<8x128xf32>
    %16 = math.absf %13 : vector<8x128xf32>
    %cst_13 = arith.constant 0.000000e+00 : f32
    %17 = vector.broadcast %cst_13 : f32 to vector<8x128xf32>
    %18 = arith.subf %17, %16 : vector<8x128xf32>
    %19 = math.exp %18 : vector<8x128xf32>
    %20 = math.log1p %19 : vector<8x128xf32>
    %21 = arith.addf %15, %20 : vector<8x128xf32>
    %22 = arith.truncf %21 : vector<8x128xf32> to vector<8x128xbf16>
    %c0_14 = arith.constant 0 : index
    %c0_15 = arith.constant 0 : index
    %c0_16 = arith.constant 0 : index
    %23 = vector.load %arg6[%c0_14, %c0_15, %c0_16] : memref<4x128x128xbf16, #tpu.memory_space<vmem>>, vector<1x128x128xbf16>
    %24 = vector.shape_cast %23 : vector<1x128x128xbf16> to vector<128x128xbf16>
    %cst_17 = arith.constant dense<0.000000e+00> : vector<8x128xf32>
    %25 = tpu.matmul %22, %24, %cst_17 {dimension_numbers = #tpu.dot_dimension_numbers<[1], [0], [0], [1], [0, 0, 1, 1], [], []>} : vector<8x128xbf16>, vector<128x128xbf16>, vector<8x128xf32> -> vector<8x128xf32>
    %c0_18 = arith.constant 0 : index
    %c0_19 = arith.constant 0 : index
    %c0_20 = arith.constant 0 : index
    %26 = vector.load %arg7[%c0_18, %c0_19, %c0_20] : memref<4x1x128xf32, #tpu.memory_space<vmem>>, vector<1x1x128xf32>
    %27 = vector.shape_cast %26 : vector<1x1x128xf32> to vector<1x128xf32>
    %28 = vector.broadcast %27 : vector<1x128xf32> to vector<8x128xf32>
    %29 = arith.addf %25, %28 : vector<8x128xf32>
    %30 = arith.addf %29, %5 : vector<8x128xf32>
    %31 = arith.truncf %30 : vector<8x128xf32> to vector<8x128xbf16>
    %c1 = arith.constant 1 : index
    %c0_21 = arith.constant 0 : index
    %c0_22 = arith.constant 0 : index
    %32 = vector.load %arg4[%c1, %c0_21, %c0_22] : memref<4x128x128xbf16, #tpu.memory_space<vmem>>, vector<1x128x128xbf16>
    %33 = vector.shape_cast %32 : vector<1x128x128xbf16> to vector<128x128xbf16>
    %cst_23 = arith.constant dense<0.000000e+00> : vector<8x128xf32>
    %34 = tpu.matmul %31, %33, %cst_23 {dimension_numbers = #tpu.dot_dimension_numbers<[1], [0], [0], [1], [0, 0, 1, 1], [], []>} : vector<8x128xbf16>, vector<128x128xbf16>, vector<8x128xf32> -> vector<8x128xf32>
    %c1_24 = arith.constant 1 : index
    %c0_25 = arith.constant 0 : index
    %c0_26 = arith.constant 0 : index
    %35 = vector.load %arg5[%c1_24, %c0_25, %c0_26] : memref<4x1x128xf32, #tpu.memory_space<vmem>>, vector<1x1x128xf32>
    %36 = vector.shape_cast %35 : vector<1x1x128xf32> to vector<1x128xf32>
    %37 = vector.broadcast %36 : vector<1x128xf32> to vector<8x128xf32>
    %38 = arith.addf %34, %37 : vector<8x128xf32>
    %cst_27 = arith.constant 0.000000e+00 : f32
    %39 = vector.broadcast %cst_27 : f32 to vector<8x128xf32>
    %40 = arith.maximumf %38, %39 : vector<8x128xf32>
    %41 = math.absf %38 : vector<8x128xf32>
    %cst_28 = arith.constant 0.000000e+00 : f32
    %42 = vector.broadcast %cst_28 : f32 to vector<8x128xf32>
    %43 = arith.subf %42, %41 : vector<8x128xf32>
    %44 = math.exp %43 : vector<8x128xf32>
    %45 = math.log1p %44 : vector<8x128xf32>
    %46 = arith.addf %40, %45 : vector<8x128xf32>
    %47 = arith.truncf %46 : vector<8x128xf32> to vector<8x128xbf16>
    %c1_29 = arith.constant 1 : index
    %c0_30 = arith.constant 0 : index
    %c0_31 = arith.constant 0 : index
    %48 = vector.load %arg6[%c1_29, %c0_30, %c0_31] : memref<4x128x128xbf16, #tpu.memory_space<vmem>>, vector<1x128x128xbf16>
    %49 = vector.shape_cast %48 : vector<1x128x128xbf16> to vector<128x128xbf16>
    %cst_32 = arith.constant dense<0.000000e+00> : vector<8x128xf32>
    %50 = tpu.matmul %47, %49, %cst_32 {dimension_numbers = #tpu.dot_dimension_numbers<[1], [0], [0], [1], [0, 0, 1, 1], [], []>} : vector<8x128xbf16>, vector<128x128xbf16>, vector<8x128xf32> -> vector<8x128xf32>
    %c1_33 = arith.constant 1 : index
    %c0_34 = arith.constant 0 : index
    %c0_35 = arith.constant 0 : index
    %51 = vector.load %arg7[%c1_33, %c0_34, %c0_35] : memref<4x1x128xf32, #tpu.memory_space<vmem>>, vector<1x1x128xf32>
    %52 = vector.shape_cast %51 : vector<1x1x128xf32> to vector<1x128xf32>
    %53 = vector.broadcast %52 : vector<1x128xf32> to vector<8x128xf32>
    %54 = arith.addf %50, %53 : vector<8x128xf32>
    %55 = arith.addf %54, %30 : vector<8x128xf32>
    %56 = arith.truncf %55 : vector<8x128xf32> to vector<8x128xbf16>
    %c2 = arith.constant 2 : index
    %c0_36 = arith.constant 0 : index
    %c0_37 = arith.constant 0 : index
    %57 = vector.load %arg4[%c2, %c0_36, %c0_37] : memref<4x128x128xbf16, #tpu.memory_space<vmem>>, vector<1x128x128xbf16>
    %58 = vector.shape_cast %57 : vector<1x128x128xbf16> to vector<128x128xbf16>
    %cst_38 = arith.constant dense<0.000000e+00> : vector<8x128xf32>
    %59 = tpu.matmul %56, %58, %cst_38 {dimension_numbers = #tpu.dot_dimension_numbers<[1], [0], [0], [1], [0, 0, 1, 1], [], []>} : vector<8x128xbf16>, vector<128x128xbf16>, vector<8x128xf32> -> vector<8x128xf32>
    %c2_39 = arith.constant 2 : index
    %c0_40 = arith.constant 0 : index
    %c0_41 = arith.constant 0 : index
    %60 = vector.load %arg5[%c2_39, %c0_40, %c0_41] : memref<4x1x128xf32, #tpu.memory_space<vmem>>, vector<1x1x128xf32>
    %61 = vector.shape_cast %60 : vector<1x1x128xf32> to vector<1x128xf32>
    %62 = vector.broadcast %61 : vector<1x128xf32> to vector<8x128xf32>
    %63 = arith.addf %59, %62 : vector<8x128xf32>
    %cst_42 = arith.constant 0.000000e+00 : f32
    %64 = vector.broadcast %cst_42 : f32 to vector<8x128xf32>
    %65 = arith.maximumf %63, %64 : vector<8x128xf32>
    %66 = math.absf %63 : vector<8x128xf32>
    %cst_43 = arith.constant 0.000000e+00 : f32
    %67 = vector.broadcast %cst_43 : f32 to vector<8x128xf32>
    %68 = arith.subf %67, %66 : vector<8x128xf32>
    %69 = math.exp %68 : vector<8x128xf32>
    %70 = math.log1p %69 : vector<8x128xf32>
    %71 = arith.addf %65, %70 : vector<8x128xf32>
    %72 = arith.truncf %71 : vector<8x128xf32> to vector<8x128xbf16>
    %c2_44 = arith.constant 2 : index
    %c0_45 = arith.constant 0 : index
    %c0_46 = arith.constant 0 : index
    %73 = vector.load %arg6[%c2_44, %c0_45, %c0_46] : memref<4x128x128xbf16, #tpu.memory_space<vmem>>, vector<1x128x128xbf16>
    %74 = vector.shape_cast %73 : vector<1x128x128xbf16> to vector<128x128xbf16>
    %cst_47 = arith.constant dense<0.000000e+00> : vector<8x128xf32>
    %75 = tpu.matmul %72, %74, %cst_47 {dimension_numbers = #tpu.dot_dimension_numbers<[1], [0], [0], [1], [0, 0, 1, 1], [], []>} : vector<8x128xbf16>, vector<128x128xbf16>, vector<8x128xf32> -> vector<8x128xf32>
    %c2_48 = arith.constant 2 : index
    %c0_49 = arith.constant 0 : index
    %c0_50 = arith.constant 0 : index
    %76 = vector.load %arg7[%c2_48, %c0_49, %c0_50] : memref<4x1x128xf32, #tpu.memory_space<vmem>>, vector<1x1x128xf32>
    %77 = vector.shape_cast %76 : vector<1x1x128xf32> to vector<1x128xf32>
    %78 = vector.broadcast %77 : vector<1x128xf32> to vector<8x128xf32>
    %79 = arith.addf %75, %78 : vector<8x128xf32>
    %80 = arith.addf %79, %55 : vector<8x128xf32>
    %81 = arith.truncf %80 : vector<8x128xf32> to vector<8x128xbf16>
    %c3 = arith.constant 3 : index
    %c0_51 = arith.constant 0 : index
    %c0_52 = arith.constant 0 : index
    %82 = vector.load %arg4[%c3, %c0_51, %c0_52] : memref<4x128x128xbf16, #tpu.memory_space<vmem>>, vector<1x128x128xbf16>
    %83 = vector.shape_cast %82 : vector<1x128x128xbf16> to vector<128x128xbf16>
    %cst_53 = arith.constant dense<0.000000e+00> : vector<8x128xf32>
    %84 = tpu.matmul %81, %83, %cst_53 {dimension_numbers = #tpu.dot_dimension_numbers<[1], [0], [0], [1], [0, 0, 1, 1], [], []>} : vector<8x128xbf16>, vector<128x128xbf16>, vector<8x128xf32> -> vector<8x128xf32>
    %c3_54 = arith.constant 3 : index
    %c0_55 = arith.constant 0 : index
    %c0_56 = arith.constant 0 : index
    %85 = vector.load %arg5[%c3_54, %c0_55, %c0_56] : memref<4x1x128xf32, #tpu.memory_space<vmem>>, vector<1x1x128xf32>
    %86 = vector.shape_cast %85 : vector<1x1x128xf32> to vector<1x128xf32>
    %87 = vector.broadcast %86 : vector<1x128xf32> to vector<8x128xf32>
    %88 = arith.addf %84, %87 : vector<8x128xf32>
    %cst_57 = arith.constant 0.000000e+00 : f32
    %89 = vector.broadcast %cst_57 : f32 to vector<8x128xf32>
    %90 = arith.maximumf %88, %89 : vector<8x128xf32>
    %91 = math.absf %88 : vector<8x128xf32>
    %cst_58 = arith.constant 0.000000e+00 : f32
    %92 = vector.broadcast %cst_58 : f32 to vector<8x128xf32>
    %93 = arith.subf %92, %91 : vector<8x128xf32>
    %94 = math.exp %93 : vector<8x128xf32>
    %95 = math.log1p %94 : vector<8x128xf32>
    %96 = arith.addf %90, %95 : vector<8x128xf32>
    %97 = arith.truncf %96 : vector<8x128xf32> to vector<8x128xbf16>
    %c3_59 = arith.constant 3 : index
    %c0_60 = arith.constant 0 : index
    %c0_61 = arith.constant 0 : index
    %98 = vector.load %arg6[%c3_59, %c0_60, %c0_61] : memref<4x128x128xbf16, #tpu.memory_space<vmem>>, vector<1x128x128xbf16>
    %99 = vector.shape_cast %98 : vector<1x128x128xbf16> to vector<128x128xbf16>
    %cst_62 = arith.constant dense<0.000000e+00> : vector<8x128xf32>
    %100 = tpu.matmul %97, %99, %cst_62 {dimension_numbers = #tpu.dot_dimension_numbers<[1], [0], [0], [1], [0, 0, 1, 1], [], []>} : vector<8x128xbf16>, vector<128x128xbf16>, vector<8x128xf32> -> vector<8x128xf32>
    %c3_63 = arith.constant 3 : index
    %c0_64 = arith.constant 0 : index
    %c0_65 = arith.constant 0 : index
    %101 = vector.load %arg7[%c3_63, %c0_64, %c0_65] : memref<4x1x128xf32, #tpu.memory_space<vmem>>, vector<1x1x128xf32>
    %102 = vector.shape_cast %101 : vector<1x1x128xf32> to vector<1x128xf32>
    %103 = vector.broadcast %102 : vector<1x128xf32> to vector<8x128xf32>
    %104 = arith.addf %100, %103 : vector<8x128xf32>
    %105 = arith.addf %104, %80 : vector<8x128xf32>
    %106 = arith.truncf %105 : vector<8x128xf32> to vector<8x128xbf16>
    %c0_66 = arith.constant 0 : index
    %c0_67 = arith.constant 0 : index
    %107 = vector.load %arg8[%c0_66, %c0_67] : memref<128x128xbf16, #tpu.memory_space<vmem>>, vector<128x128xbf16>
    %cst_68 = arith.constant dense<0.000000e+00> : vector<8x128xf32>
    %108 = tpu.matmul %106, %107, %cst_68 {dimension_numbers = #tpu.dot_dimension_numbers<[1], [0], [0], [1], [0, 0, 1, 1], [], []>} : vector<8x128xbf16>, vector<128x128xbf16>, vector<8x128xf32> -> vector<8x128xf32>
    %c0_69 = arith.constant 0 : index
    %c0_70 = arith.constant 0 : index
    %109 = vector.load %arg9[%c0_69, %c0_70] : memref<1x128xf32, #tpu.memory_space<vmem>>, vector<1x128xf32>
    %110 = vector.broadcast %109 : vector<1x128xf32> to vector<8x128xf32>
    %111 = arith.addf %108, %110 : vector<8x128xf32>
    %c0_71 = arith.constant 0 : index
    %c0_72 = arith.constant 0 : index
    %112 = vector.load %arg10[%c0_71, %c0_72] : memref<8x128xf32, #tpu.memory_space<vmem>>, vector<8x128xf32>
    tpu.vector_store %arg10[%c0_71, %c0_72], %111 {strides = array<i32>} : memref<8x128xf32, #tpu.memory_space<vmem>>, vector<8x128xf32>,
    return
  }
  func.func @transform_0(%arg0: i32) -> (i32, i32) {
    %c0_i32 = arith.constant 0 : i32
    %c0_i32_0 = arith.constant 0 : i32
    return %arg0, %c0_i32 : i32, i32
  }
  func.func @transform_1(%arg0: i32) -> (i32, i32) {
    %c0_i32 = arith.constant 0 : i32
    %c0_i32_0 = arith.constant 0 : i32
    %c0_i32_1 = arith.constant 0 : i32
    return %c0_i32, %c0_i32_0 : i32, i32
  }
  func.func @transform_2(%arg0: i32) -> (i32, i32) {
    %c0_i32 = arith.constant 0 : i32
    %c0_i32_0 = arith.constant 0 : i32
    %c0_i32_1 = arith.constant 0 : i32
    return %c0_i32, %c0_i32_0 : i32, i32
  }
  func.func @transform_3(%arg0: i32) -> (i32, i32, i32) {
    %c0_i32 = arith.constant 0 : i32
    %c0_i32_0 = arith.constant 0 : i32
    %c0_i32_1 = arith.constant 0 : i32
    %c0_i32_2 = arith.constant 0 : i32
    return %c0_i32, %c0_i32_0, %c0_i32_1 : i32, i32, i32
  }
  func.func @transform_4(%arg0: i32) -> (i32, i32, i32) {
    %c0_i32 = arith.constant 0 : i32
    %c0_i32_0 = arith.constant 0 : i32
    %c0_i32_1 = arith.constant 0 : i32
    %c0_i32_2 = arith.constant 0 : i32
    return %c0_i32, %c0_i32_0, %c0_i32_1 : i32, i32, i32
  }
  func.func @transform_5(%arg0: i32) -> (i32, i32, i32) {
    %c0_i32 = arith.constant 0 : i32
    %c0_i32_0 = arith.constant 0 : i32
    %c0_i32_1 = arith.constant 0 : i32
    %c0_i32_2 = arith.constant 0 : i32
    return %c0_i32, %c0_i32_0, %c0_i32_1 : i32, i32, i32
  }
  func.func @transform_6(%arg0: i32) -> (i32, i32, i32) {
    %c0_i32 = arith.constant 0 : i32
    %c0_i32_0 = arith.constant 0 : i32
    %c0_i32_1 = arith.constant 0 : i32
    %c0_i32_2 = arith.constant 0 : i32
    return %c0_i32, %c0_i32_0, %c0_i32_1 : i32, i32, i32
  }
  func.func @transform_7(%arg0: i32) -> (i32, i32) {
    %c0_i32 = arith.constant 0 : i32
    %c0_i32_0 = arith.constant 0 : i32
    %c0_i32_1 = arith.constant 0 : i32
    return %c0_i32, %c0_i32_0 : i32, i32
  }
  func.func @transform_8(%arg0: i32) -> (i32, i32) {
    %c0_i32 = arith.constant 0 : i32
    %c0_i32_0 = arith.constant 0 : i32
    %c0_i32_1 = arith.constant 0 : i32
    return %c0_i32, %c0_i32_0 : i32, i32
  }
  func.func @transform_9(%arg0: i32) -> (i32, i32) {
    %c0_i32 = arith.constant 0 : i32
    %c0_i32_0 = arith.constant 0 : i32
    return %arg0, %c0_i32 : i32, i32
  }
}

</mosaic_0001>

<bundles_post_ra>
// kernel: geodesic_net.1
= control target key start
LH: loop header
LB: loop body
LE: loop exit
PB: predicated region body
PF: predicated region fallthrough
CT: control target
= control target key end

     0   :  { %s1797_s1 = inlined_call_operand.vmem [shape: bf16[128,128], index: 1, kind: input, shape index: {}]   ;;  %s1798_s3 = inlined_call_operand.vmem [shape: bf16[4,128,128], index: 3, kind: input, shape index: {}]   ;;  %s1799_s2 = inlined_call_operand.vmem [shape: f32[1,128], index: 2, kind: input, shape index: {}]   ;;  %s1800_s0 = inlined_call_operand.vmem [shape: bf16[8,128], index: 0, kind: input, shape index: {}]   ;;  %s1801_s4 = inlined_call_operand.vmem [shape: f32[4,1,128], index: 4, kind: input, shape index: {}]   ;;  %s1802_s6 = inlined_call_operand.vmem [shape: f32[4,1,128], index: 6, kind: input, shape index: {}]   ;;  %s1803_s5 = inlined_call_operand.vmem [shape: bf16[4,128,128], index: 5, kind: input, shape index: {}]   ;;  %s1804_s7 = inlined_call_operand.vmem [shape: bf16[128,128], index: 7, kind: input, shape index: {}]   ;;  %s1805_s8 = inlined_call_operand.vmem [shape: f32[1,128], index: 8, kind: input, shape index: {}]   ;;  %s1806_s9 = inlined_call_operand.vmem [shape: f32[8,128], index: 9, kind: output, shape index: {}]  }
   0x1   :  { %v1362_v0 = vld [vmem:[%s1797_s1 + $0x38] sm:$0xff]  ;;  %v1361_v1 = vld [vmem:[%s1797_s1 + $0x30] sm:$0xff]  ;;  %v1360_v4 = vld [vmem:[%s1797_s1 + $0x28] sm:$0xff] }
   0x2   :  { %101 = vmatpush.bf16.msra.mxu0 %v1362_v0  ;;  %v1370_v2 = vld [vmem:[%s1798_s3 + $0x38] sm:$0xff]  ;;  %v1369_v3 = vld [vmem:[%s1798_s3 + $0x30] sm:$0xff]  ;;  %v1368_v5 = vld [vmem:[%s1798_s3 + $0x28] sm:$0xff] }
   0x3   :  { %183 = vmatpush.bf16.msra.mxu1 %v1370_v2  ;;  %v1359_v6 = vld [vmem:[%s1797_s1 + $0x20] sm:$0xff]  ;;  %v1358_v8 = vld [vmem:[%s1797_s1 + $0x18] sm:$0xff]  ;;  %v1357_v10 = vld [vmem:[%s1797_s1 + $0x10] sm:$0xff] }
   0x4   :  { %v1367_v7 = vld [vmem:[%s1798_s3 + $0x20] sm:$0xff]  ;;  %v1366_v9 = vld [vmem:[%s1798_s3 + $0x18] sm:$0xff]  ;;  %v1365_v11 = vld [vmem:[%s1798_s3 + $0x10] sm:$0xff] }
   0x5   :  { %v1356_v12 = vld [vmem:[%s1797_s1 + $0x8] sm:$0xff]  ;;  %v1355_v14 = vld [vmem:[%s1797_s1] sm:$0xff]  ;;  %v1378_v22 = vld [vmem:[%s1803_s5 + $0x38] sm:$0xff] }
   0x6   :  { %102 = vmatpush.bf16.msra.mxu0 %v1361_v1  ;;  %v1364_v13 = vld [vmem:[%s1798_s3 + $0x8] sm:$0xff]  ;;  %v32_v15 = vld [vmem:[%s1800_s0] sm:$0xf]  ;;  %280 = vmatpush.bf16.msra.mxu2 %v1378_v22  ;;  %v1377_v23 = vld [vmem:[%s1803_s5 + $0x30] sm:$0xff] }
   0x7   :  { %184 = vmatpush.bf16.msra.mxu1 %v1369_v3  ;;  %v1363_v16 = vld [vmem:[%s1798_s3] sm:$0xff]  ;;  %v1376_v24 = vld [vmem:[%s1803_s5 + $0x28] sm:$0xff]  ;;  %v1374_v26 = vld [vmem:[%s1803_s5 + $0x18] sm:$0xff] }
   0x8   :  { %v1435_v17 = vld [vmem:[%s1799_s2] ss:$0 sm:$0xff]  ;;  %v1373_v27 = vld [vmem:[%s1803_s5 + $0x10] sm:$0xff]  ;;  %v1372_v28 = vld [vmem:[%s1803_s5 + $0x8] sm:$0xff] }
   0x9   :  { %v1375_v25 = vld [vmem:[%s1803_s5 + $0x20] sm:$0xff]  ;;  %v1386_v32 = vld [vmem:[%s1798_s3 + $0x78] sm:$0xff]  ;;  %v1385_v34 = vld [vmem:[%s1798_s3 + $0x70] sm:$0xff] }
   0xa   :  { %103 = vmatpush.bf16.msra.mxu0 %v1360_v4  ;;  %281 = vmatpush.bf16.msra.mxu2 %v1377_v23  ;;  %v1371_v29 = vld [vmem:[%s1803_s5] sm:$0xff]  ;;  %v1384_v37 = vld [vmem:[%s1798_s3 + $0x68] sm:$0xff]  ;;  %v1382_v41 = vld [vmem:[%s1798_s3 + $0x58] sm:$0xff] }
   0xb   :  { %185 = vmatpush.bf16.msra.mxu1 %v1368_v5  ;;  %v1436_v30 = vld [vmem:[%s1801_s4] ss:$0 sm:$0xff]  ;;  %365 = vmatpush.bf16.msra.mxu3 %v1386_v32  ;;  %v1381_v45 = vld [vmem:[%s1798_s3 + $0x50] sm:$0xff]  ;;  %v1380_v55 = vld [vmem:[%s1798_s3 + $0x48] sm:$0xff] }
   0xc   :  { %v1383_v40 = vld [vmem:[%s1798_s3 + $0x60] sm:$0xff]  ;;  %v1394_v63 = vld [vmem:[%s1803_s5 + $0x78] sm:$0xff]  ;;  %v1393_v0 = vld [vmem:[%s1803_s5 + $0x70] sm:$0xff] }
   0xd   :  { %v1379_v56 = vld [vmem:[%s1798_s3 + $0x40] sm:$0xff]  ;;  %v1392_v1 = vld [vmem:[%s1803_s5 + $0x68] sm:$0xff]  ;;  %v1390_v3 = vld [vmem:[%s1803_s5 + $0x58] sm:$0xff] }
   0xe   :  { %104 = vmatpush.bf16.msra.mxu0 %v1359_v6  ;;  %282 = vmatpush.bf16.msra.mxu2 %v1376_v24  ;;  %v1437_v57 = vld [vmem:[%s1802_s6] ss:$0 sm:$0xff]  ;;  %v1389_v4 = vld [vmem:[%s1803_s5 + $0x50] sm:$0xff]  ;;  %v1388_v5 = vld [vmem:[%s1803_s5 + $0x48] sm:$0xff] }
   0xf   :  { %186 = vmatpush.bf16.msra.mxu1 %v1367_v7  ;;  %366 = vmatpush.bf16.msra.mxu3 %v1385_v34  ;;  %v1391_v2 = vld [vmem:[%s1803_s5 + $0x60] sm:$0xff]  ;;  %v1397_v22 = vld [vmem:[%s1798_s3 + $0x90] sm:$0xff]  ;;  %v1396_v32 = vld [vmem:[%s1798_s3 + $0x88] sm:$0xff] }
  0x10   :  { %v1387_v6 = vld [vmem:[%s1803_s5 + $0x40] sm:$0xff] }
  0x11   :  { %v1438_v7 = vld [vmem:[%s1801_s4 + $0x1] ss:$0 sm:$0xff] }
  0x12   :  { %105 = vmatpush.bf16.msra.mxu0 %v1358_v8  ;;  %283 = vmatpush.bf16.msra.mxu2 %v1375_v25  ;;  %v1439_v34 = vld [vmem:[%s1802_s6 + $0x1] ss:$0 sm:$0xff] }
  0x13   :  { %187 = vmatpush.bf16.msra.mxu1 %v1366_v9  ;;  %367 = vmatpush.bf16.msra.mxu3 %v1384_v37  ;;  %v1402_v9 = vld [vmem:[%s1798_s3 + $0xb8] sm:$0xff] }
  0x16   :  { %106 = vmatpush.bf16.msra.mxu0 %v1357_v10  ;;  %284 = vmatpush.bf16.msra.mxu2 %v1374_v26 }
  0x17   :  { %188 = vmatpush.bf16.msra.mxu1 %v1365_v11  ;;  %368 = vmatpush.bf16.msra.mxu3 %v1383_v40  ;;  %v1401_v11 = vld [vmem:[%s1798_s3 + $0xb0] sm:$0xff]  ;;  %v1410_v40 = vld [vmem:[%s1803_s5 + $0xb8] sm:$0xff] }
  0x1a   :  { %107 = vmatpush.bf16.msra.mxu0 %v1356_v12  ;;  %285 = vmatpush.bf16.msra.mxu2 %v1373_v27 }
  0x1b   :  { %189 = vmatpush.bf16.msra.mxu1 %v1364_v13  ;;  %369 = vmatpush.bf16.msra.mxu3 %v1382_v41  ;;  %v1409_v41 = vld [vmem:[%s1803_s5 + $0xb0] sm:$0xff] }
  0x1e   :  { %108 = vmatpush.bf16.msra.mxu0 %v1355_v14  ;;  %286 = vmatpush.bf16.msra.mxu2 %v1372_v28  ;;  %v1400_v14 = vld [vmem:[%s1798_s3 + $0xa8] sm:$0xff] }
  0x1f   :  { %190 = vmatpush.bf16.msra.mxu1 %v1363_v16  ;;  %370 = vmatpush.bf16.msra.mxu3 %v1381_v45  ;;  %v1405_v45 = vld [vmem:[%s1803_s5 + $0x90] sm:$0xff] }
  0x21   :  { %109 = vmatmul.bf16.vlgmr.msra.gmra.mxu0 %v32_v15 }
  0x22   :  { %287 = vmatpush.bf16.msra.mxu2 %v1371_v29  ;;  %464 = vmatpush.bf16.msrb.mxu0 %v1394_v63  ;;  %v1413_v63 = vld [vmem:[%s1798_s3 + $0xd0] sm:$0xff] }
  0x23   :  { %371 = vmatpush.bf16.msra.mxu3 %v1380_v55  ;;  %549 = vmatpush.bf16.msrb.mxu1 %v1402_v9  ;;  %v1416_v55 = vld [vmem:[%s1798_s3 + $0xe8] sm:$0xff] }
  0x24   :  { %v1412_v9 = vld [vmem:[%s1798_s3 + $0xc8] sm:$0xff] }
  0x26   :  { %465 = vmatpush.bf16.msrb.mxu0 %v1393_v0  ;;  %648 = vmatpush.bf16.msrb.mxu2 %v1410_v40  ;;  %v1429_v40 = vld [vmem:[%s1804_s7 + $0x10] sm:$0xff] }
  0x27   :  { %372 = vmatpush.bf16.msra.mxu3 %v1379_v56  ;;  %550 = vmatpush.bf16.msrb.mxu1 %v1401_v11  ;;  %v1441_v11 = vld [vmem:[%s1802_s6 + $0x2] ss:$0 sm:$0xff] }
  0x2a   :  { %466 = vmatpush.bf16.msrb.mxu0 %v1392_v1  ;;  %649 = vmatpush.bf16.msrb.mxu2 %v1409_v41 }
  0x2b   :  { %551 = vmatpush.bf16.msrb.mxu1 %v1400_v14 }
  0x2e   :  { %467 = vmatpush.bf16.msrb.mxu0 %v1391_v2 }
  0x32   :  { %468 = vmatpush.bf16.msrb.mxu0 %v1390_v3 }
  0x36   :  { %469 = vmatpush.bf16.msrb.mxu0 %v1389_v4 }
  0x3a   :  { %470 = vmatpush.bf16.msrb.mxu0 %v1388_v5 }
  0x3e   :  { %471 = vmatpush.bf16.msrb.mxu0 %v1387_v6 }
  0x9e   :  { %v110_v18 = vpop.f32.mrf.mxu0 }
  0x9f   :  { %v1565_v19 = vadd.f32 %v1435_v17, %v110_v18  ;;  %v1399_v17 = vld [vmem:[%s1798_s3 + $0xa0] sm:$0xff]  ;;  %v1398_v18 = vld [vmem:[%s1798_s3 + $0x98] sm:$0xff] }
  0xa0   :  { %552 = vmatpush.bf16.msrb.mxu1 %v1399_v17  ;;  %v1426_v17 = vld [vmem:[%s1803_s5 + $0xf8] sm:$0xff] }
  0xa1   :  { %v114_v20 = vpack.c.bf16 %v1565_v19, %v1565_v19  ;;  %832 = vmatpush.bf16.msra.mxu0 %v1426_v17 }
  0xa3   :  { %191 = vmatmul.bf16.vlgmr.msra.gmra.mxu1 %v114_v20 }
  0xa4   :  { %553 = vmatpush.bf16.msrb.mxu1 %v1398_v18  ;;  %v1425_v18 = vld [vmem:[%s1803_s5 + $0xf0] sm:$0xff] }
  0xa5   :  { %833 = vmatpush.bf16.msra.mxu0 %v1425_v18 }
  0xa6   :  { %v112_v21 = vpop.f32.mrf.mxu0 }
  0xa8   :  { %554 = vmatpush.bf16.msrb.mxu1 %v1397_v22  ;;  %v1421_v22 = vld [vmem:[%s1803_s5 + $0xd0] sm:$0xff] }
  0xac   :  { %555 = vmatpush.bf16.msrb.mxu1 %v1396_v32  ;;  %v1432_v32 = vld [vmem:[%s1804_s7 + $0x28] sm:$0xff] }
 0x120   :  { %v192_v31 = vpop.f32.mrf.mxu1 }
 0x121   :  { %v193_v33 = vadd.f32 %v1436_v30, %v192_v31 }
 0x123   :  { %v197_v35 = vand.u32 2147483647, %v193_v33  ;;  %v196_v51 = vmax.f32 %v193_v33, 0.0  ;;  %v1395_v33 = vld [vmem:[%s1798_s3 + $0x80] sm:$0xff] }
 0x124   :  { %556 = vmatpush.bf16.msrb.mxu1 %v1395_v33 }
 0x125   :  { %v198_v36 = vsub.f32 0.0, %v197_v35 }
 0x127   :  { %v199_v38 = vmul.f32 1.442695, %v198_v36 }
 0x128   :  { %v194_v39 = vpop.f32.mrf.mxu1 }
 0x129   :  { %1445 = vpow2.f32 %v199_v38 }
 0x12f   :  { %v1446_v42 = vpop.eup %1445 }
 0x130   :  { %v201_v43 = vadd.f32 1.0, %v1446_v42  ;;  %v204_v44 = vmul.f32 -0.5, %v1446_v42  ;;  %v207_v47 = vand.u32 2147483647, %v1446_v42 }
 0x132   :  { %1447 = vlog2.f32 %v201_v43  ;;  %v205_v46 = vadd.f32 1.0, %v204_v44  ;;  %vm208_vm0 = vcmp.lt.f32.partialorder %v207_v47, 0.0004427343  ;;  %v1407_v43 = vld [vmem:[%s1803_s5 + $0xa0] sm:$0xff]  ;;  %v1406_v44 = vld [vmem:[%s1803_s5 + $0x98] sm:$0xff] }
 0x133   :  { %v1403_v47 = vld [vmem:[%s1803_s5 + $0x80] sm:$0xff] }
 0x134   :  { %v206_v50 = vmul.f32 %v1446_v42, %v205_v46  ;;  %v1408_v42 = vld [vmem:[%s1803_s5 + $0xa8] sm:$0xff] }
 0x135   :  { %650 = vmatpush.bf16.msrb.mxu2 %v1408_v42  ;;  %v1404_v46 = vld [vmem:[%s1803_s5 + $0x88] sm:$0xff] }
 0x138   :  { %v1448_v48 = vpop.eup %1447 }
 0x139   :  { %v203_v49 = vmul.f32 0.6931472, %v1448_v48  ;;  %651 = vmatpush.bf16.msrb.mxu2 %v1407_v43  ;;  %v1440_v48 = vld [vmem:[%s1801_s4 + $0x2] ss:$0 sm:$0xff] }
 0x13b   :  { %v209_v52 = vsel %vm208_vm0, %v206_v50, %v203_v49  ;;  %v1418_v50 = vld [vmem:[%s1798_s3 + $0xf8] sm:$0xff] }
 0x13c   :  { %v210_v53 = vadd.f32 %v209_v52, %v196_v51  ;;  %733 = vmatpush.bf16.msrb.mxu3 %v1418_v50  ;;  %v1417_v52 = vld [vmem:[%s1798_s3 + $0xf0] sm:$0xff]  ;;  %v1428_v50 = vld [vmem:[%s1804_s7 + $0x8] sm:$0xff] }
 0x13d   :  { %652 = vmatpush.bf16.msrb.mxu2 %v1406_v44 }
 0x13e   :  { %v211_v54 = vpack.c.bf16 %v210_v53, %v210_v53 }
 0x140   :  { %288 = vmatmul.bf16.vlgmr.msra.gmra.mxu2 %v211_v54  ;;  %734 = vmatpush.bf16.msrb.mxu3 %v1417_v52  ;;  %v1443_v52 = vld [vmem:[%s1802_s6 + $0x3] ss:$0 sm:$0xff] }
 0x141   :  { %653 = vmatpush.bf16.msrb.mxu2 %v1405_v45 }
 0x144   :  { %735 = vmatpush.bf16.msrb.mxu3 %v1416_v55 }
 0x145   :  { %654 = vmatpush.bf16.msrb.mxu2 %v1404_v46 }
 0x149   :  { %655 = vmatpush.bf16.msrb.mxu2 %v1403_v47 }
 0x1c3   :  { %v289_v58 = vpop.f32.mrf.mxu2 }
 0x1c4   :  { %v290_v59 = vadd.f32 %v1437_v57, %v289_v58  ;;  %v1415_v58 = vld [vmem:[%s1798_s3 + $0xe0] sm:$0xff] }
 0x1c5   :  { %736 = vmatpush.bf16.msrb.mxu3 %v1415_v58  ;;  %v1444_v58 = vld [vmem:[%s1805_s8] ss:$0 sm:$0xff] }
 0x1c6   :  { %v293_v60 = vadd.f32 %v290_v59, %v1565_v19  ;;  %v1414_v59 = vld [vmem:[%s1798_s3 + $0xd8] sm:$0xff] }
 0x1c8   :  { %v294_v61 = vpack.c.bf16 %v293_v60, %v293_v60 }
 0x1c9   :  { %737 = vmatpush.bf16.msrb.mxu3 %v1414_v59 }
 0x1ca   :  { %373 = vmatmul.bf16.vlgmr.msra.gmra.mxu3 %v294_v61 }
 0x1cb   :  { %v291_v62 = vpop.f32.mrf.mxu2 }
 0x1cd   :  { %738 = vmatpush.bf16.msrb.mxu3 %v1413_v63 }
 0x1d1   :  { %739 = vmatpush.bf16.msrb.mxu3 %v1412_v9 }
 0x24d   :  { %v374_v8 = vpop.f32.mrf.mxu3 }
 0x24e   :  { %v375_v10 = vadd.f32 %v1438_v7, %v374_v8 }
 0x250   :  { %v379_v12 = vand.u32 2147483647, %v375_v10  ;;  %v378_v28 = vmax.f32 %v375_v10, 0.0  ;;  %v1411_v10 = vld [vmem:[%s1798_s3 + $0xc0] sm:$0xff] }
 0x251   :  { %740 = vmatpush.bf16.msrb.mxu3 %v1411_v10 }
 0x252   :  { %v380_v13 = vsub.f32 0.0, %v379_v12 }
 0x254   :  { %v381_v15 = vmul.f32 1.442695, %v380_v13 }
 0x255   :  { %v376_v16 = vpop.f32.mrf.mxu3 }
 0x256   :  { %1449 = vpow2.f32 %v381_v15 }
 0x25c   :  { %v1450_v19 = vpop.eup %1449 }
 0x25d   :  { %v383_v20 = vadd.f32 1.0, %v1450_v19  ;;  %v386_v21 = vmul.f32 -0.5, %v1450_v19  ;;  %v389_v24 = vand.u32 2147483647, %v1450_v19 }
 0x25f   :  { %1451 = vlog2.f32 %v383_v20  ;;  %v387_v23 = vadd.f32 1.0, %v386_v21  ;;  %vm390_vm1 = vcmp.lt.f32.partialorder %v389_v24, 0.0004427343  ;;  %v1423_v20 = vld [vmem:[%s1803_s5 + $0xe0] sm:$0xff]  ;;  %v1422_v21 = vld [vmem:[%s1803_s5 + $0xd8] sm:$0xff] }
 0x260   :  { %v1419_v24 = vld [vmem:[%s1803_s5 + $0xc0] sm:$0xff] }
 0x261   :  { %v388_v27 = vmul.f32 %v1450_v19, %v387_v23  ;;  %v1424_v19 = vld [vmem:[%s1803_s5 + $0xe8] sm:$0xff] }
 0x262   :  { %834 = vmatpush.bf16.msra.mxu0 %v1424_v19  ;;  %v1420_v23 = vld [vmem:[%s1803_s5 + $0xc8] sm:$0xff] }
 0x265   :  { %v1452_v25 = vpop.eup %1451 }
 0x266   :  { %v385_v26 = vmul.f32 0.6931472, %v1452_v25  ;;  %835 = vmatpush.bf16.msra.mxu0 %v1423_v20  ;;  %v1442_v25 = vld [vmem:[%s1801_s4 + $0x3] ss:$0 sm:$0xff] }
 0x268   :  { %v391_v29 = vsel %vm390_vm1, %v388_v27, %v385_v26  ;;  %v1434_v27 = vld [vmem:[%s1804_s7 + $0x38] sm:$0xff] }
 0x269   :  { %v392_v30 = vadd.f32 %v391_v29, %v378_v28  ;;  %915 = vmatpush.bf16.msra.mxu1 %v1434_v27  ;;  %v1433_v29 = vld [vmem:[%s1804_s7 + $0x30] sm:$0xff] }
 0x26a   :  { %836 = vmatpush.bf16.msra.mxu0 %v1422_v21 }
 0x26b   :  { %v393_v31 = vpack.c.bf16 %v392_v30, %v392_v30 }
 0x26d   :  { %472 = vmatmul.bf16.vlgmr.msrb.gmra.mxu0 %v393_v31  ;;  %916 = vmatpush.bf16.msra.mxu1 %v1433_v29 }
 0x26e   :  { %837 = vmatpush.bf16.msra.mxu0 %v1421_v22 }
 0x271   :  { %917 = vmatpush.bf16.msra.mxu1 %v1432_v32 }
 0x272   :  { %838 = vmatpush.bf16.msra.mxu0 %v1420_v23 }
 0x276   :  { %839 = vmatpush.bf16.msra.mxu0 %v1419_v24 }
 0x2ea   :  { %v473_v35 = vpop.f32.mrf.mxu0 }
 0x2eb   :  { %v474_v36 = vadd.f32 %v1439_v34, %v473_v35  ;;  %v1431_v35 = vld [vmem:[%s1804_s7 + $0x20] sm:$0xff] }
 0x2ec   :  { %918 = vmatpush.bf16.msra.mxu1 %v1431_v35 }
 0x2ed   :  { %v477_v37 = vadd.f32 %v474_v36, %v293_v60  ;;  %v1430_v36 = vld [vmem:[%s1804_s7 + $0x18] sm:$0xff] }
 0x2ef   :  { %v478_v38 = vpack.c.bf16 %v477_v37, %v477_v37 }
 0x2f0   :  { %919 = vmatpush.bf16.msra.mxu1 %v1430_v36 }
 0x2f1   :  { %557 = vmatmul.bf16.vlgmr.msrb.gmra.mxu1 %v478_v38 }
 0x2f2   :  { %v475_v39 = vpop.f32.mrf.mxu0 }
 0x2f4   :  { %920 = vmatpush.bf16.msra.mxu1 %v1429_v40 }
 0x2f8   :  { %921 = vmatpush.bf16.msra.mxu1 %v1428_v50 }
 0x36e   :  { %v558_v49 = vpop.f32.mrf.mxu1 }
 0x36f   :  { %v559_v51 = vadd.f32 %v1440_v48, %v558_v49 }
 0x371   :  { %v563_v53 = vand.u32 2147483647, %v559_v51  ;;  %v562_v5 = vmax.f32 %v559_v51, 0.0  ;;  %v1427_v51 = vld [vmem:[%s1804_s7] sm:$0xff] }
 0x372   :  { %922 = vmatpush.bf16.msra.mxu1 %v1427_v51 }
 0x373   :  { %v564_v54 = vsub.f32 0.0, %v563_v53 }
 0x375   :  { %v565_v56 = vmul.f32 1.442695, %v564_v54 }
 0x376   :  { %v560_v57 = vpop.f32.mrf.mxu1 }
 0x377   :  { %1453 = vpow2.f32 %v565_v56 }
 0x37d   :  { %v1454_v60 = vpop.eup %1453 }
 0x37e   :  { %v567_v61 = vadd.f32 1.0, %v1454_v60  ;;  %v570_v62 = vmul.f32 -0.5, %v1454_v60  ;;  %v573_v1 = vand.u32 2147483647, %v1454_v60 }
 0x380   :  { %1455 = vlog2.f32 %v567_v61  ;;  %v571_v0 = vadd.f32 1.0, %v570_v62  ;;  %vm574_vm2 = vcmp.lt.f32.partialorder %v573_v1, 0.0004427343 }
 0x382   :  { %v572_v4 = vmul.f32 %v1454_v60, %v571_v0 }
 0x386   :  { %v1456_v2 = vpop.eup %1455 }
 0x387   :  { %v569_v3 = vmul.f32 0.6931472, %v1456_v2 }
 0x389   :  { %v575_v6 = vsel %vm574_vm2, %v572_v4, %v569_v3 }
 0x38a   :  { %v576_v7 = vadd.f32 %v575_v6, %v562_v5 }
 0x38c   :  { %v577_v8 = vpack.c.bf16 %v576_v7, %v576_v7 }
 0x38e   :  { %656 = vmatmul.bf16.vlgmr.msrb.gmra.mxu2 %v577_v8 }
 0x411   :  { %v657_v12 = vpop.f32.mrf.mxu2 }
 0x412   :  { %v658_v13 = vadd.f32 %v1441_v11, %v657_v12 }
 0x414   :  { %v1732_v14 = vadd.f32 %v658_v13, %v477_v37 }
 0x416   :  { %v662_v15 = vpack.c.bf16 %v1732_v14, %v1732_v14 }
 0x418   :  { %741 = vmatmul.bf16.vlgmr.msrb.gmra.mxu3 %v662_v15 }
 0x419   :  { %v659_v16 = vpop.f32.mrf.mxu2 }
 0x49b   :  { %v742_v26 = vpop.f32.mrf.mxu3 }
 0x49c   :  { %v743_v28 = vadd.f32 %v1442_v25, %v742_v26 }
 0x49e   :  { %v747_v30 = vand.u32 2147483647, %v743_v28  ;;  %v746_v46 = vmax.f32 %v743_v28, 0.0 }
 0x4a0   :  { %v748_v31 = vsub.f32 0.0, %v747_v30 }
 0x4a2   :  { %v749_v33 = vmul.f32 1.442695, %v748_v31 }
 0x4a3   :  { %v744_v34 = vpop.f32.mrf.mxu3 }
 0x4a4   :  { %1457 = vpow2.f32 %v749_v33 }
 0x4aa   :  { %v1458_v37 = vpop.eup %1457 }
 0x4ab   :  { %v751_v38 = vadd.f32 1.0, %v1458_v37  ;;  %v754_v39 = vmul.f32 -0.5, %v1458_v37  ;;  %v757_v42 = vand.u32 2147483647, %v1458_v37 }
 0x4ad   :  { %1459 = vlog2.f32 %v751_v38  ;;  %v755_v41 = vadd.f32 1.0, %v754_v39  ;;  %vm758_vm3 = vcmp.lt.f32.partialorder %v757_v42, 0.0004427343 }
 0x4af   :  { %v756_v45 = vmul.f32 %v1458_v37, %v755_v41 }
 0x4b3   :  { %v1460_v43 = vpop.eup %1459 }
 0x4b4   :  { %v753_v44 = vmul.f32 0.6931472, %v1460_v43 }
 0x4b6   :  { %v759_v47 = vsel %vm758_vm3, %v756_v45, %v753_v44 }
 0x4b7   :  { %v760_v48 = vadd.f32 %v759_v47, %v746_v46 }
 0x4b9   :  { %v761_v49 = vpack.c.bf16 %v760_v48, %v760_v48 }
 0x4bb   :  { %840 = vmatmul.bf16.vlgmr.msra.gmra.mxu0 %v761_v49 }
 0x538   :  { %v841_v53 = vpop.f32.mrf.mxu0 }
 0x539   :  { %v842_v54 = vadd.f32 %v1443_v52, %v841_v53 }
 0x53b   :  { %v845_v55 = vadd.f32 %v842_v54, %v1732_v14 }
 0x53d   :  { %v846_v56 = vpack.c.bf16 %v845_v55, %v845_v55 }
 0x53f   :  { %923 = vmatmul.bf16.vlgmr.msra.gmra.mxu1 %v846_v56 }
 0x540   :  { %v843_v57 = vpop.f32.mrf.mxu0 }
 0x5bc   :  { %v924_v59 = vpop.f32.mrf.mxu1 }
 0x5bd   :  { %v925_v60 = vadd.f32 %v1444_v58, %v924_v59 }
 0x5bf   :  { %928 = vst [vmem:[%s1806_s9] sm:$0xff] %v925_v60 }
 0x5c4   :  { %v926_v61 = vpop.f32.mrf.mxu1 }

</bundles_post_ra>
